<compile_context>
chip_gen: v6e
topology: v6e:2x2x1
jax: 0.10.0
libtpu: 0.0.40
codegen_flags: <defaults>
</compile_context>

<pallas_src>
import math

import jax
import jax.numpy as jnp
from jax.experimental import pallas as pl
from jax.experimental.pallas import tpu as pltpu

LANES = 128
SUBLANES = 8


# ----------------------------------------------------------------------------- helpers

def _cdiv(a, b):
    return -(-a // b)


def _round_up(a, b):
    return _cdiv(a, b) * b


def _hw_budget():
    """(max_block_rows, vmem_limit_bytes) per TPU generation (VMEM-aware)."""
    try:
        vmem_bytes = int(pltpu.get_tpu_info().vmem_capacity_bytes)
    except Exception:
        vmem_bytes = 64 * 1024 * 1024                 # conservative (v7x-sized)
    if vmem_bytes >= 100 * 1024 * 1024:               # v5e / v6e: 128 MiB VMEM
        return 8192, 64 * 1024 * 1024
    return 4096, 32 * 1024 * 1024                     # v7x: 64 MiB VMEM


def _plan_stream(rows, grid_t):
    """Pick (block_rows, num_blocks) so the stream spreads over 2*grid_t blocks."""
    target = _cdiv(rows, 2 * grid_t)
    br = _round_up(max(target, 1), SUBLANES)
    if br >= rows:
        return rows, 1                                # single full-slab block
    return br, _cdiv(rows, br)


def _lane_slab(x, neutral):
    """Split x into a lane-dense (rows,128) slab + (<128)-element tail.

    No full-tensor pad copy: when numel % 128 == 0 (the common case) the reshape
    is free; otherwise only the tiny tail is handled separately in the wrapper.
    `neutral` is the fill value used when the tensor is too small to form a slab
    (0 for squared-error streams, 1.0 for likelihood streams so log() == 0).
    """
    n = x.size
    flat = x.reshape(-1)
    n_main = (n // LANES) * LANES
    if n_main == n:
        return flat.reshape(-1, LANES), None
    if n_main == 0:
        return jnp.full((SUBLANES, LANES), neutral, dtype=x.dtype), flat
    return flat[:n_main].reshape(-1, LANES), flat[n_main:]


# ----------------------------------------------------------------------------- kernel

def _make_kernel(grid_t, sq_meta, y_meta, z_meta):
    """Fused 3-way streaming reduction.  meta = (rows, block_rows, nb, half)."""

    def _emit(acc_ref, compute_vals, rows, br, nb, half, c, i):
        gbi = c * half + i                      # global block index of this stream
        last_rows = rows - (nb - 1) * br        # valid rows in the last block
        needs_mask = (nb > 1) and (last_rows < br)
        always_in_range = (2 * half == nb) and (half == grid_t)

        def accumulate(vals):
            main = (br // SUBLANES) * SUBLANES
            if main:                            # pure VALU vreg adds, no XLU
                acc_ref[...] += vals[:main].reshape(
                    main // SUBLANES, SUBLANES, LANES).sum(axis=0)
            rem = br - main                     # only for tiny full-slab blocks
            if rem:
                acc_ref[pl.ds(0, rem), :] += vals[main:, :]

        def step_full():
            accumulate(compute_vals())

        if needs_mask:
            def step_masked():                  # ragged last block only
                vals = compute_vals()
                rmask = (jax.lax.broadcasted_iota(jnp.int32, (br, LANES), 0)
                         < last_rows)
                accumulate(jnp.where(rmask, vals, 0.0))
            pl.when(gbi == nb - 1)(step_masked)
            pl.when(gbi < nb - 1)(step_full)
        elif always_in_range:
            step_full()
        else:
            pl.when(gbi < nb)(step_full)

    r_sq, br_sq, nb_sq, hf_sq = sq_meta
    r_y, br_y, nb_y, hf_y = y_meta
    r_z, br_z, nb_z, hf_z = z_meta

    def kernel(xh_ref, tg_ref, ly_ref, lz_ref,     # lane-dense VMEM blocks
               osq_ref, oly_ref, olz_ref,          # (1,8,128) per-core partials
               acc_sq, acc_ly, acc_lz):            # (8,128) f32 scratch accums
        c = pl.program_id(0)    # TensorCore half ("parallel")
        i = pl.program_id(1)    # streaming step  ("arbitrary")

        @pl.when(i == 0)
        def _init():
            acc_sq[...] = jnp.zeros_like(acc_sq)
            acc_ly[...] = jnp.zeros_like(acc_ly)
            acc_lz[...] = jnp.zeros_like(acc_lz)

        def sq_vals():
            d = xh_ref[...].astype(jnp.float32) - tg_ref[...].astype(jnp.float32)
            return d * d

        def ly_vals():
            return jnp.log(ly_ref[...].astype(jnp.float32))

        def lz_vals():
            return jnp.log(lz_ref[...].astype(jnp.float32))

        _emit(acc_sq, sq_vals, r_sq, br_sq, nb_sq, hf_sq, c, i)
        _emit(acc_ly, ly_vals, r_y, br_y, nb_y, hf_y, c, i)
        _emit(acc_lz, lz_vals, r_z, br_z, nb_z, hf_z, c, i)

        @pl.when(i == pl.num_programs(1) - 1)
        def _finalize():                       # one full-vreg store per core
            osq_ref[0] = acc_sq[...]
            oly_ref[0] = acc_ly[...]
            olz_ref[0] = acc_lz[...]

    return kernel


# ----------------------------------------------------------------------------- entry point

@jax.jit
def rate_distortion_loss(x_hat, target, likelihoods_y, likelihoods_z, lmbda):
    """JAX/Pallas equivalent of RateDistortionLoss.forward.

    output = {'x_hat': x_hat, 'likelihoods': {'y': likelihoods_y, 'z': likelihoods_z}}
    """
    N, _, H, W = target.shape
    assert x_hat.size == target.size, "x_hat and target must have the same numel"

    xh2, xh_tail = _lane_slab(x_hat, 0.0)
    tg2, tg_tail = _lane_slab(target, 0.0)
    ly2, ly_tail = _lane_slab(likelihoods_y, 1.0)
    lz2, lz_tail = _lane_slab(likelihoods_z, 1.0)

    r_sq, r_y, r_z = xh2.shape[0], ly2.shape[0], lz2.shape[0]

    max_rows, vmem_limit = _hw_budget()
    grid_t = max(1, max(_cdiv(_cdiv(r, max_rows), 2) for r in (r_sq, r_y, r_z)))

    br_sq, nb_sq = _plan_stream(r_sq, grid_t)
    br_y, nb_y = _plan_stream(r_y, grid_t)
    br_z, nb_z = _plan_stream(r_z, grid_t)
    hf_sq, hf_y, hf_z = _cdiv(nb_sq, 2), _cdiv(nb_y, 2), _cdiv(nb_z, 2)

    kernel = _make_kernel(
        grid_t,
        (r_sq, br_sq, nb_sq, hf_sq),
        (r_y, br_y, nb_y, hf_y),
        (r_z, br_z, nb_z, hf_z),
    )

    def clamped(nb, half):
        # Clamp so steps past a stream's end re-address the last block
        # (no new DMA is issued when the block index repeats).
        return lambda c, i: (jnp.minimum(c * half + i, nb - 1), 0)

    part_shape = jax.ShapeDtypeStruct((2, SUBLANES, LANES), jnp.float32)
    out_spec = pl.BlockSpec((1, SUBLANES, LANES), lambda c, i: (c, 0, 0))

    osq, oly, olz = pl.pallas_call(
        kernel,
        out_shape=(part_shape, part_shape, part_shape),
        grid_spec=pltpu.PrefetchScalarGridSpec(
            num_scalar_prefetch=0,
            grid=(2, grid_t),
            in_specs=[
                pl.BlockSpec((br_sq, LANES), clamped(nb_sq, hf_sq)),  # x_hat
                pl.BlockSpec((br_sq, LANES), clamped(nb_sq, hf_sq)),  # target
                pl.BlockSpec((br_y, LANES), clamped(nb_y, hf_y)),     # lk_y
                pl.BlockSpec((br_z, LANES), clamped(nb_z, hf_z)),     # lk_z
            ],
            out_specs=(out_spec, out_spec, out_spec),
            scratch_shapes=[
                pltpu.VMEM((SUBLANES, LANES), jnp.float32),
                pltpu.VMEM((SUBLANES, LANES), jnp.float32),
                pltpu.VMEM((SUBLANES, LANES), jnp.float32),
            ],
        ),
        compiler_params=pltpu.CompilerParams(
            dimension_semantics=("parallel", "arbitrary"),
            vmem_limit_bytes=vmem_limit,
        ),
    )(xh2, tg2, ly2, lz2)

    # Trivial scalar epilogue in XLA (2*8*128 partial sums per reduction).
    sq_sum = jnp.sum(osq)
    ly_sum = jnp.sum(oly)
    lz_sum = jnp.sum(olz)

    # Fold lane tails (<128 elements, usually absent) — negligible XLA work.
    if xh_tail is not None:
        d = xh_tail.astype(jnp.float32) - tg_tail.astype(jnp.float32)
        sq_sum = sq_sum + jnp.sum(d * d)
    if ly_tail is not None:
        ly_sum = ly_sum + jnp.sum(jnp.log(ly_tail.astype(jnp.float32)))
    if lz_tail is not None:
        lz_sum = lz_sum + jnp.sum(jnp.log(lz_tail.astype(jnp.float32)))

    num_pixels = N * H * W
    inv_bpp_denom = 1.0 / (-math.log(2.0) * float(num_pixels))

    mse = sq_sum / jnp.float32(x_hat.size)
    bpp = (ly_sum + lz_sum) * jnp.float32(inv_bpp_denom)
    lam = jnp.asarray(lmbda, dtype=jnp.float32)
    loss = lam * jnp.float32(255.0 ** 2) * mse + bpp
    return {"mse_loss": mse, "bpp_loss": bpp, "loss": loss}


# ----------------------------------------------------------------------------- reference

def rate_distortion_loss_ref(x_hat, target, lk_y, lk_z, lmbda):
    N, _, H, W = target.shape
    mse = jnp.mean((x_hat.astype(jnp.float32) - target.astype(jnp.float32)) ** 2)
    distortion = 255.0 ** 2 * mse
    num_pixels = N * H * W
    bpp = sum(
        jnp.sum(jnp.log(lk.astype(jnp.float32))) / (-math.log(2.0) * num_pixels)
        for lk in (lk_y, lk_z)
    )
    return {"mse_loss": mse, "bpp_loss": bpp, "loss": lmbda * distortion + bpp}


# ----------------------------------------------------------------------------- main

if __name__ == "__main__":
    key = jax.random.PRNGKey(0)
    k1, k2, k3, k4 = jax.random.split(key, 4)

    # NCHW image batch and its reconstruction
    N, C, H, W = 2, 3, 16, 16
    target = jax.random.uniform(k1, (N, C, H, W), dtype=jnp.float32)
    x_hat = target + 0.05 * jax.random.normal(k2, (N, C, H, W), dtype=jnp.float32)

    # entropy-model likelihoods (strictly positive, in (0, 1])
    lk_y = jax.random.uniform(k3, (N, 32, 8, 8), dtype=jnp.float32,
                              minval=1e-3, maxval=1.0)
    lk_z = jax.random.uniform(k4, (N, 16, 4, 4), dtype=jnp.float32,
                              minval=1e-3, maxval=1.0)

    lmbda = 0.01

    out = rate_distortion_loss(x_hat, target, lk_y, lk_z, lmbda)
    jax.block_until_ready(out)

    ref = rate_distortion_loss_ref(x_hat, target, lk_y, lk_z, lmbda)
    for k in ("mse_loss", "bpp_loss", "loss"):
        assert jnp.allclose(out[k], ref[k], rtol=1e-5, atol=1e-5), (
            k, out[k], ref[k])

    print("KERNEL_OK")
</pallas_src>

<mosaic_0001>
module attributes {stable_mosaic.version = 11 : i64} {
  func.func @kernel(%arg0: i32, %arg1: i32, %arg2: memref<8x128xf32, #tpu.memory_space<vmem>>, %arg3: memref<8x128xf32, #tpu.memory_space<vmem>>, %arg4: memref<16x128xf32, #tpu.memory_space<vmem>>, %arg5: memref<4x128xf32, #tpu.memory_space<vmem>>, %arg6: memref<1x8x128xf32, #tpu.memory_space<vmem>>, %arg7: memref<1x8x128xf32, #tpu.memory_space<vmem>>, %arg8: memref<1x8x128xf32, #tpu.memory_space<vmem>>, %arg9: memref<8x128xf32, #tpu.memory_space<vmem>>, %arg10: memref<8x128xf32, #tpu.memory_space<vmem>>, %arg11: memref<8x128xf32, #tpu.memory_space<vmem>>) attributes {dimension_semantics = [#tpu.dimension_semantics<parallel>, #tpu.dimension_semantics<arbitrary>], iteration_bounds = array<i64: 2, 1>, scalar_prefetch = 0 : i64, scratch_operands = 3 : i64, tpu.core_type = #tpu.core_type<tc>, window_params = [{transform_indices = @transform_0, window_bounds = array<i64: 8, 128>}, {transform_indices = @transform_1, window_bounds = array<i64: 8, 128>}, {transform_indices = @transform_2, window_bounds = array<i64: 16, 128>}, {transform_indices = @transform_3, window_bounds = array<i64: 4, 128>}, {transform_indices = @transform_4, window_bounds = array<i64: 1, 8, 128>}, {transform_indices = @transform_5, window_bounds = array<i64: 1, 8, 128>}, {transform_indices = @transform_6, window_bounds = array<i64: 1, 8, 128>}]} {
    %c0_i32 = arith.constant 0 : i32
    %0 = arith.cmpi eq, %arg1, %c0_i32 : i32
    %1 = arith.extui %0 : i1 to i32
    %c0_i32_0 = arith.constant 0 : i32
    %2 = arith.cmpi ne, %1, %c0_i32_0 : i32
    scf.if %2 {
      %cst_15 = arith.constant 0.000000e+00 : f32
      %26 = vector.broadcast %cst_15 : f32 to vector<8x128xf32>
      %c0_16 = arith.constant 0 : index
      %c0_17 = arith.constant 0 : index
      %27 = vector.load %arg9[%c0_16, %c0_17] : memref<8x128xf32, #tpu.memory_space<vmem>>, vector<8x128xf32>
      tpu.vector_store %arg9[%c0_16, %c0_17], %26 {strides = array<i32>} : memref<8x128xf32, #tpu.memory_space<vmem>>, vector<8x128xf32>,
      %cst_18 = arith.constant 0.000000e+00 : f32
      %28 = vector.broadcast %cst_18 : f32 to vector<8x128xf32>
      %c0_19 = arith.constant 0 : index
      %c0_20 = arith.constant 0 : index
      %29 = vector.load %arg10[%c0_19, %c0_20] : memref<8x128xf32, #tpu.memory_space<vmem>>, vector<8x128xf32>
      tpu.vector_store %arg10[%c0_19, %c0_20], %28 {strides = array<i32>} : memref<8x128xf32, #tpu.memory_space<vmem>>, vector<8x128xf32>,
      %cst_21 = arith.constant 0.000000e+00 : f32
      %30 = vector.broadcast %cst_21 : f32 to vector<8x128xf32>
      %c0_22 = arith.constant 0 : index
      %c0_23 = arith.constant 0 : index
      %31 = vector.load %arg11[%c0_22, %c0_23] : memref<8x128xf32, #tpu.memory_space<vmem>>, vector<8x128xf32>
      tpu.vector_store %arg11[%c0_22, %c0_23], %30 {strides = array<i32>} : memref<8x128xf32, #tpu.memory_space<vmem>>, vector<8x128xf32>,
    } else {
    }
    %c1_i32 = arith.constant 1 : i32
    %3 = arith.muli %arg0, %c1_i32 : i32
    %4 = arith.addi %3, %arg1 : i32
    %c1_i32_1 = arith.constant 1 : i32
    %5 = arith.cmpi eq, %4, %c1_i32_1 : i32
    %6 = arith.extui %5 : i1 to i32
    %c0_i32_2 = arith.constant 0 : i32
    %7 = arith.cmpi ne, %6, %c0_i32_2 : i32
    scf.if %7 {
      %c0_15 = arith.constant 0 : index
      %c0_16 = arith.constant 0 : index
      %26 = vector.load %arg2[%c0_15, %c0_16] : memref<8x128xf32, #tpu.memory_space<vmem>>, vector<8x128xf32>
      %c0_17 = arith.constant 0 : index
      %c0_18 = arith.constant 0 : index
      %27 = vector.load %arg3[%c0_17, %c0_18] : memref<8x128xf32, #tpu.memory_space<vmem>>, vector<8x128xf32>
      %28 = arith.subf %26, %27 : vector<8x128xf32>
      %29 = arith.mulf %28, %28 : vector<8x128xf32>
      %30 = tpu.iota {dimensions = array<i32: 0>} : vector<8x128xi32>
      %c4_i32 = arith.constant 4 : i32
      %31 = vector.broadcast %c4_i32 : i32 to vector<8x128xi32>
      %32 = arith.cmpi slt, %30, %31 : vector<8x128xi32>
      %cst_19 = arith.constant 0.000000e+00 : f32
      %33 = vector.broadcast %cst_19 : f32 to vector<8x128xf32>
      %34 = arith.select %32, %29, %33 : vector<8x128xi1>, vector<8x128xf32>
      %c0_20 = arith.constant 0 : index
      %c0_21 = arith.constant 0 : index
      %35 = vector.load %arg9[%c0_20, %c0_21] : memref<8x128xf32, #tpu.memory_space<vmem>>, vector<8x128xf32>
      %36 = vector.shape_cast %34 : vector<8x128xf32> to vector<1x8x128xf32>
      %cst_22 = arith.constant dense<0.000000e+00> : vector<8x128xf32>
      %37 = vector.multi_reduction <add>, %36, %cst_22 [0] : vector<1x8x128xf32> to vector<8x128xf32>
      %38 = arith.addf %35, %37 : vector<8x128xf32>
      %c0_23 = arith.constant 0 : index
      %c0_24 = arith.constant 0 : index
      %39 = vector.load %arg9[%c0_23, %c0_24] : memref<8x128xf32, #tpu.memory_space<vmem>>, vector<8x128xf32>
      tpu.vector_store %arg9[%c0_23, %c0_24], %38 {strides = array<i32>} : memref<8x128xf32, #tpu.memory_space<vmem>>, vector<8x128xf32>,
    } else {
    }
    %c1_i32_3 = arith.constant 1 : i32
    %8 = arith.cmpi slt, %4, %c1_i32_3 : i32
    %9 = arith.extui %8 : i1 to i32
    %c0_i32_4 = arith.constant 0 : i32
    %10 = arith.cmpi ne, %9, %c0_i32_4 : i32
    scf.if %10 {
      %c0_15 = arith.constant 0 : index
      %c0_16 = arith.constant 0 : index
      %26 = vector.load %arg2[%c0_15, %c0_16] : memref<8x128xf32, #tpu.memory_space<vmem>>, vector<8x128xf32>
      %c0_17 = arith.constant 0 : index
      %c0_18 = arith.constant 0 : index
      %27 = vector.load %arg3[%c0_17, %c0_18] : memref<8x128xf32, #tpu.memory_space<vmem>>, vector<8x128xf32>
      %28 = arith.subf %26, %27 : vector<8x128xf32>
      %29 = arith.mulf %28, %28 : vector<8x128xf32>
      %c0_19 = arith.constant 0 : index
      %c0_20 = arith.constant 0 : index
      %30 = vector.load %arg9[%c0_19, %c0_20] : memref<8x128xf32, #tpu.memory_space<vmem>>, vector<8x128xf32>
      %31 = vector.shape_cast %29 : vector<8x128xf32> to vector<1x8x128xf32>
      %cst_21 = arith.constant dense<0.000000e+00> : vector<8x128xf32>
      %32 = vector.multi_reduction <add>, %31, %cst_21 [0] : vector<1x8x128xf32> to vector<8x128xf32>
      %33 = arith.addf %30, %32 : vector<8x128xf32>
      %c0_22 = arith.constant 0 : index
      %c0_23 = arith.constant 0 : index
      %34 = vector.load %arg9[%c0_22, %c0_23] : memref<8x128xf32, #tpu.memory_space<vmem>>, vector<8x128xf32>
      tpu.vector_store %arg9[%c0_22, %c0_23], %33 {strides = array<i32>} : memref<8x128xf32, #tpu.memory_space<vmem>>, vector<8x128xf32>,
    } else {
    }
    %c0 = arith.constant 0 : index
    %c0_5 = arith.constant 0 : index
    %11 = vector.load %arg4[%c0, %c0_5] : memref<16x128xf32, #tpu.memory_space<vmem>>, vector<16x128xf32>
    %12 = math.log %11 : vector<16x128xf32>
    %c0_6 = arith.constant 0 : index
    %c0_7 = arith.constant 0 : index
    %13 = vector.load %arg10[%c0_6, %c0_7] : memref<8x128xf32, #tpu.memory_space<vmem>>, vector<8x128xf32>
    %14 = vector.shape_cast %12 : vector<16x128xf32> to vector<2x8x128xf32>
    %cst = arith.constant dense<0.000000e+00> : vector<8x128xf32>
    %15 = vector.multi_reduction <add>, %14, %cst [0] : vector<2x8x128xf32> to vector<8x128xf32>
    %16 = arith.addf %13, %15 : vector<8x128xf32>
    %c0_8 = arith.constant 0 : index
    %c0_9 = arith.constant 0 : index
    %17 = vector.load %arg10[%c0_8, %c0_9] : memref<8x128xf32, #tpu.memory_space<vmem>>, vector<8x128xf32>
    tpu.vector_store %arg10[%c0_8, %c0_9], %16 {strides = array<i32>} : memref<8x128xf32, #tpu.memory_space<vmem>>, vector<8x128xf32>,
    %c1_i32_10 = arith.constant 1 : i32
    %18 = arith.muli %arg0, %c1_i32_10 : i32
    %19 = arith.addi %18, %arg1 : i32
    %c1_i32_11 = arith.constant 1 : i32
    %20 = arith.cmpi slt, %19, %c1_i32_11 : i32
    %21 = arith.extui %20 : i1 to i32
    %c0_i32_12 = arith.constant 0 : i32
    %22 = arith.cmpi ne, %21, %c0_i32_12 : i32
    scf.if %22 {
      %c0_15 = arith.constant 0 : index
      %c0_16 = arith.constant 0 : index
      %26 = vector.load %arg5[%c0_15, %c0_16] : memref<4x128xf32, #tpu.memory_space<vmem>>, vector<4x128xf32>
      %27 = math.log %26 : vector<4x128xf32>
      %c0_17 = arith.constant 0 : index
      %c0_18 = arith.constant 0 : index
      %28 = vector.load %arg11[%c0_17, %c0_18] : memref<8x128xf32, #tpu.memory_space<vmem>>, vector<4x128xf32>
      %29 = arith.addf %28, %27 : vector<4x128xf32>
      %c0_19 = arith.constant 0 : index
      %c0_20 = arith.constant 0 : index
      %30 = vector.load %arg11[%c0_19, %c0_20] : memref<8x128xf32, #tpu.memory_space<vmem>>, vector<4x128xf32>
      tpu.vector_store %arg11[%c0_19, %c0_20], %29 {strides = array<i32>} : memref<8x128xf32, #tpu.memory_space<vmem>>, vector<4x128xf32>,
    } else {
    }
    %c0_i32_13 = arith.constant 0 : i32
    %23 = arith.cmpi eq, %arg1, %c0_i32_13 : i32
    %24 = arith.extui %23 : i1 to i32
    %c0_i32_14 = arith.constant 0 : i32
    %25 = arith.cmpi ne, %24, %c0_i32_14 : i32
    scf.if %25 {
      %c0_15 = arith.constant 0 : index
      %c0_16 = arith.constant 0 : index
      %26 = vector.load %arg9[%c0_15, %c0_16] : memref<8x128xf32, #tpu.memory_space<vmem>>, vector<8x128xf32>
      %c0_17 = arith.constant 0 : index
      %c0_18 = arith.constant 0 : index
      %c0_19 = arith.constant 0 : index
      %27 = vector.load %arg6[%c0_17, %c0_18, %c0_19] : memref<1x8x128xf32, #tpu.memory_space<vmem>>, vector<1x8x128xf32>
      %28 = vector.shape_cast %27 : vector<1x8x128xf32> to vector<8x128xf32>
      %29 = vector.shape_cast %26 : vector<8x128xf32> to vector<1x8x128xf32>
      tpu.vector_store %arg6[%c0_17, %c0_18, %c0_19], %29 {strides = array<i32>} : memref<1x8x128xf32, #tpu.memory_space<vmem>>, vector<1x8x128xf32>,
      %c0_20 = arith.constant 0 : index
      %c0_21 = arith.constant 0 : index
      %30 = vector.load %arg10[%c0_20, %c0_21] : memref<8x128xf32, #tpu.memory_space<vmem>>, vector<8x128xf32>
      %c0_22 = arith.constant 0 : index
      %c0_23 = arith.constant 0 : index
      %c0_24 = arith.constant 0 : index
      %31 = vector.load %arg7[%c0_22, %c0_23, %c0_24] : memref<1x8x128xf32, #tpu.memory_space<vmem>>, vector<1x8x128xf32>
      %32 = vector.shape_cast %31 : vector<1x8x128xf32> to vector<8x128xf32>
      %33 = vector.shape_cast %30 : vector<8x128xf32> to vector<1x8x128xf32>
      tpu.vector_store %arg7[%c0_22, %c0_23, %c0_24], %33 {strides = array<i32>} : memref<1x8x128xf32, #tpu.memory_space<vmem>>, vector<1x8x128xf32>,
      %c0_25 = arith.constant 0 : index
      %c0_26 = arith.constant 0 : index
      %34 = vector.load %arg11[%c0_25, %c0_26] : memref<8x128xf32, #tpu.memory_space<vmem>>, vector<8x128xf32>
      %c0_27 = arith.constant 0 : index
      %c0_28 = arith.constant 0 : index
      %c0_29 = arith.constant 0 : index
      %35 = vector.load %arg8[%c0_27, %c0_28, %c0_29] : memref<1x8x128xf32, #tpu.memory_space<vmem>>, vector<1x8x128xf32>
      %36 = vector.shape_cast %35 : vector<1x8x128xf32> to vector<8x128xf32>
      %37 = vector.shape_cast %34 : vector<8x128xf32> to vector<1x8x128xf32>
      tpu.vector_store %arg8[%c0_27, %c0_28, %c0_29], %37 {strides = array<i32>} : memref<1x8x128xf32, #tpu.memory_space<vmem>>, vector<1x8x128xf32>,
    } else {
    }
    return
  }
  func.func @transform_0(%arg0: i32, %arg1: i32) -> (i32, i32) {
    %c1_i32 = arith.constant 1 : i32
    %0 = arith.muli %arg0, %c1_i32 : i32
    %1 = arith.addi %0, %arg1 : i32
    %c1_i32_0 = arith.constant 1 : i32
    %2 = arith.minsi %1, %c1_i32_0 : i32
    %c0_i32 = arith.constant 0 : i32
    %c0_i32_1 = arith.constant 0 : i32
    return %2, %c0_i32 : i32, i32
  }
  func.func @transform_1(%arg0: i32, %arg1: i32) -> (i32, i32) {
    %c1_i32 = arith.constant 1 : i32
    %0 = arith.muli %arg0, %c1_i32 : i32
    %1 = arith.addi %0, %arg1 : i32
    %c1_i32_0 = arith.constant 1 : i32
    %2 = arith.minsi %1, %c1_i32_0 : i32
    %c0_i32 = arith.constant 0 : i32
    %c0_i32_1 = arith.constant 0 : i32
    return %2, %c0_i32 : i32, i32
  }
  func.func @transform_2(%arg0: i32, %arg1: i32) -> (i32, i32) {
    %c1_i32 = arith.constant 1 : i32
    %0 = arith.muli %arg0, %c1_i32 : i32
    %1 = arith.addi %0, %arg1 : i32
    %c1_i32_0 = arith.constant 1 : i32
    %2 = arith.minsi %1, %c1_i32_0 : i32
    %c0_i32 = arith.constant 0 : i32
    %c0_i32_1 = arith.constant 0 : i32
    return %2, %c0_i32 : i32, i32
  }
  func.func @transform_3(%arg0: i32, %arg1: i32) -> (i32, i32) {
    %c1_i32 = arith.constant 1 : i32
    %0 = arith.muli %arg0, %c1_i32 : i32
    %1 = arith.addi %0, %arg1 : i32
    %c0_i32 = arith.constant 0 : i32
    %2 = arith.minsi %1, %c0_i32 : i32
    %c0_i32_0 = arith.constant 0 : i32
    %c0_i32_1 = arith.constant 0 : i32
    return %2, %c0_i32_0 : i32, i32
  }
  func.func @transform_4(%arg0: i32, %arg1: i32) -> (i32, i32, i32) {
    %c0_i32 = arith.constant 0 : i32
    %c0_i32_0 = arith.constant 0 : i32
    %c0_i32_1 = arith.constant 0 : i32
    return %arg0, %c0_i32, %c0_i32_0 : i32, i32, i32
  }
  func.func @transform_5(%arg0: i32, %arg1: i32) -> (i32, i32, i32) {
    %c0_i32 = arith.constant 0 : i32
    %c0_i32_0 = arith.constant 0 : i32
    %c0_i32_1 = arith.constant 0 : i32
    return %arg0, %c0_i32, %c0_i32_0 : i32, i32, i32
  }
  func.func @transform_6(%arg0: i32, %arg1: i32) -> (i32, i32, i32) {
    %c0_i32 = arith.constant 0 : i32
    %c0_i32_0 = arith.constant 0 : i32
    %c0_i32_1 = arith.constant 0 : i32
    return %arg0, %c0_i32, %c0_i32_0 : i32, i32, i32
  }
}

</mosaic_0001>

<bundles_post_ra>
// kernel: rate_distortion_loss.1
= control target key start
LH: loop header
LB: loop body
LE: loop exit
PB: predicated region body
PF: predicated region fallthrough
CT: control target
= control target key end

     0   :  { %s761_s21 = smov 0   ;;  %s763_s22 = smov 0   ;;  %s848_s0 = inlined_call_operand.vmem [shape: f32[12,128], index: 0, kind: input, shape index: {}]   ;;  %s849_s1 = inlined_call_operand.vmem [shape: f32[12,128], index: 1, kind: input, shape index: {}]   ;;  %s850_s2 = inlined_call_operand.vmem [shape: f32[32,128], index: 2, kind: input, shape index: {}]   ;;  %s851_s3 = inlined_call_operand.vmem [shape: f32[4,128], index: 3, kind: input, shape index: {}]   ;;  %s852_s4 = inlined_call_operand.vmem [shape: f32[2,8,128], index: 4, kind: output, shape index: {0}]   ;;  %s853_s5 = inlined_call_operand.vmem [shape: f32[2,8,128], index: 5, kind: output, shape index: {1}]   ;;  %s854_s6 = inlined_call_operand.vmem [shape: f32[2,8,128], index: 6, kind: output, shape index: {2}]  }
   0x1   :  { %855 = sst [smem:[#allocation5_spill]] %s848_s0  ;;  %s765_s23 = smov 0  }
   0x2 LB: > { %s29_s24 = sadd.s32 1, %s719_s22  ;;  %p647_p0 = scmp.ge.s32.totalorder %s723_s23, 1  ;;  %s723_s23 = sphi %s765_s23, %s17_s23   ;;  %s719_s22 = sphi %s763_s22, %s858_s22   ;;  %s715_s21 = sphi %s761_s21, %s857_s21  }
   0x3   : > { %p31_p1 = scmp.ge.s32.totalorder %s29_s24, 2  ;;  %p305_p2 = scmp.lt.s32.totalorder %s723_s23, 3 }
   0x5   : > { %s860_s24 = smov (%p31_p1, %s29_s24), 0  ;;  %p306_p3 = pnand %p647_p0, %p305_p2 }
   0x6   : > { %p367_p4 = scmp.lt.s32.totalorder (!%p306_p3), %s715_s21, 1  ;;  %p399_p5 = scmp.lt.s32.totalorder (!%p306_p3), %s715_s21, 0 }
   0x7   : > { %309 = sbr.rel (%p306_p3) target bundleno = 104 (0x68), region = 36  ;;  %s856_s0 = sld [smem:[#allocation5_spill]] (!%p306_p3) }
   0x8   : > { %p665_p7 = scmp.ne.s32.totalorder (!%p306_p3), %s715_s21, 1 }
   0xc   : > { %v725_v0 = vmov 0.0   ;;  %s368_s25 = scalar_select %p367_p4, %s715_s21, 1 }
   0xd   : > { %424 = vst [vmem:[#allocation2] sm:$0xff] %v725_v0  ;;  %425 = vst [vmem:[#allocation3] sm:$0xff] %v725_v0  ;;  %s400_s26 = scalar_select %p399_p5, %s715_s21, 0 }
   0xe   : > { %426 = vst [vmem:[#allocation4] sm:$0xff] %v725_v0  ;;  %s370_s27 = scalar_select %p367_p4, %s368_s25, 1 }
   0xf   : > { %s656_s28 = sshll.u32 %s368_s25, 1  ;;  %s787_s29 = sshll.u32 %s368_s25, 3 }
  0x10   : > { %s651_s30 = sshll.u32 %s370_s27, 3  ;;  %p390_p6 = scmp.lt.s32.totalorder %s656_s28, 3 }
  0x11   : > { %s372_s9 = scalar_lea.vmem %s856_s0, %s651_s30  ;;  %s382_s12 = scalar_lea.vmem %s849_s1, %s651_s30 }
  0x12   : > { %s862_s28 = smov (!%p390_p6, %s656_s28), 3  ;;  %s864_s26 = smov (!%p399_p5, %s400_s26), 0 }
  0x13   : > { %s657_s13 = sshll.u32 %s862_s28, 3  ;;  %s411_s16 = scalar_lea.vmem %s852_s4, %s787_s29 }
  0x14   : > { %s393_s19 = scalar_lea.vmem %s850_s2, %s657_s13  ;;  %s661_s20 = sshll.u32 %s864_s26, 2 }
  0x15   : > { %s807_s7 = scalar_lea.vmem %s851_s3, %s661_s20  ;;  %s415_s10 = scalar_lea.vmem %s853_s5, %s787_s29 }
  0x16   : > { %s419_s0 = scalar_lea.vmem %s854_s6, %s787_s29  ;;  %431 = sbr.rel (%p665_p7) target bundleno = 37 (0x25), region = 44 }
  0x1b   : > { %v432_v1 = vld [vmem:[%s372_s9] sm:$0xff]  ;;  %v436_v3 = vlaneseq }
  0x1c   : > { %v433_v2 = vld [vmem:[%s382_s12] sm:$0xff] }
  0x1d   : > { %v434_v4 = vsub.f32 %v432_v1, %v433_v2  ;;  %v437_v5 = vshrl.u32 %v436_v3, 7  ;;  %v440_v7 = vld [vmem:[#allocation2] sm:$0xff] }
  0x1f   : > { %v435_v6 = vmul.f32 %v434_v4, %v434_v4  ;;  %vm438_vm0 = vcmp.lt.s32.totalorder %v437_v5, 4 }
  0x21   : > { %v439_v8 = vsel %vm438_vm0, %v435_v6, 0.0 }
  0x22   : > { %v442_v9 = vadd.f32 %v440_v7, %v439_v8 }
  0x24   : > { %443 = vst [vmem:[#allocation2] sm:$0xff] %v442_v9 }
  0x25 PF: > { %p666_p8 = scmp.ge.s32.totalorder %s715_s21, 1 }
  0x27   : > { %447 = sbr.rel (%p666_p8) target bundleno = 53 (0x35), region = 48 }
  0x2c   : > { %v448_v10 = vld [vmem:[%s372_s9] sm:$0xff] }
  0x2d   : > { %v449_v11 = vld [vmem:[%s382_s12] sm:$0xff] }
  0x2e   : > { %v450_v12 = vsub.f32 %v448_v10, %v449_v11  ;;  %v452_v13 = vld [vmem:[#allocation2] sm:$0xff] }
  0x30   : > { %v451_v14 = vmul.f32 %v450_v12, %v450_v12 }
  0x32   : > { %v454_v15 = vadd.f32 %v452_v13, %v451_v14 }
  0x34   : > { %455 = vst [vmem:[#allocation2] sm:$0xff] %v454_v15 }
  0x35 PF: > { %v456_v16 = vld [vmem:[%s393_s19] sm:$0xff]  ;;  %v457_v17 = vld [vmem:[%s393_s19 + $0x8] sm:$0xff] }
  0x36   : > { %695 = vlog2.f32 %v456_v16  ;;  %v462_v22 = vld [vmem:[#allocation3] sm:$0xff] }
  0x37   : > { %697 = vlog2.f32 %v457_v17 }
  0x43   : > { %v696_v18 = vpop.eup %695 }
  0x44   : > { %v698_v19 = vpop.eup %697  ;;  %v459_v20 = vmul.f32 0.6931472, %v696_v18 }
  0x45   : > { %v461_v21 = vmul.f32 0.6931472, %v698_v19 }
  0x47   : > { %v463_v23 = vadd.f32 %v461_v21, %v459_v20  ;;  %468 = sbr.rel (%p666_p8) target bundleno = 96 (0x60), region = 52 }
  0x49   : > { %v464_v24 = vadd.f32 %v463_v23, %v462_v22 }
  0x4b   : > { %465 = vst [vmem:[#allocation3] sm:$0xff] %v464_v24 }
  0x4c   : > { %v469_v25 = vld [vmem:[%s807_s7] sm:$0xf]  ;;  %v472_v27 = vld [vmem:[#allocation4] sm:$0xf] }
  0x4d   : > { %699 = vlog2.f32 %v469_v25 }
  0x5a   : > { %v700_v26 = vpop.eup %699 }
  0x5b   : > { %v471_v28 = vmul.f32 0.6931472, %v700_v26 }
  0x5d   : > { %v473_v29 = vadd.f32 %v472_v27, %v471_v28 }
  0x5f   : > { %474 = vst [vmem:[#allocation4] sm:$0xf] %v473_v29 }
  0x60 PF: > { %v478_v30 = vld [vmem:[#allocation2] sm:$0xff] }
  0x61   : > { %479 = vst [vmem:[%s411_s16] sm:$0xff] %v478_v30 }
  0x66   : > { %v480_v31 = vld [vmem:[#allocation3] sm:$0xff]  ;;  %v482_v32 = vld [vmem:[#allocation4] sm:$0xff] }
  0x67   : > { %481 = vst [vmem:[%s415_s10] sm:$0xff] %v480_v31  ;;  %483 = vst [vmem:[%s419_s0] sm:$0xff] %v482_v32 }
  0x68 PF: > { %s17_s23 = sadd.s32 1, %s723_s23   ;;  %s857_s21 = smov %s719_s22 }
  0x69   : > { %p14_p9 = scmp.ge.s32.totalorder %s17_s23, 4   ;;  %s858_s22 = smov %s860_s24 }
  0x6b   :  { %16 = sbr.rel (!%p14_p9) target bundleno = 2 (0x2), region = 119 }

</bundles_post_ra>
